<compile_context>
chip_gen: v7x
topology: tpu7x:2x2x1
jax: 0.10.0
libtpu: 0.0.40
codegen_flags: <defaults>
</compile_context>

<pallas_src>
import functools

import jax
import jax.numpy as jnp
import numpy as np
from jax import lax
from jax.experimental import pallas as pl
from jax.experimental.pallas import tpu as pltpu


def _round_up(a: int, b: int) -> int:
    return (a + b - 1) // b * b


def _length_regulator_kernel(bounds_ref, x_ref, out_ref):
    # bounds_ref: (1, 2, T_pad) int32 — row 0 = frame start (exclusive cumsum),
    #             row 1 = frame end (inclusive cumsum) of each phoneme.
    # x_ref:      (1, T_pad, H_pad)
    # out_ref:    (1, TM, H_pad)  — one max_len tile of the expanded output.
    T = x_ref.shape[1]
    TM = out_ref.shape[1]
    m0 = pl.program_id(1) * TM                               # frame offset of this tile

    starts = bounds_ref[0, 0:1, :]                            # (1, T) int32
    ends = bounds_ref[0, 1:2, :]                              # (1, T) int32
    frame = lax.broadcasted_iota(jnp.int32, (TM, T), 0) + m0  # (TM, T)

    # One-hot selection in the input dtype: bf16 x -> native bf16 MXU passes
    # (exact, sel is {0,1}, accumulation is fp32); fp32 x keeps the fp32 path.
    sel = ((frame >= starts) & (frame < ends)).astype(x_ref.dtype)

    out_ref[0] = jnp.dot(
        sel, x_ref[0], preferred_element_type=jnp.float32
    ).astype(out_ref.dtype)


@functools.partial(jax.jit, static_argnums=(2,))
def length_regulator(x, duration, max_len):
    """x: (B, T, H) float; duration: (B, T) int; max_len: static python int.

    Returns (output (B, max_len, H) in x.dtype, mel_len (B,) int32).
    """
    # TODO(synk): the PyTorch max_len=None branch (output length = max(mel_len))
    # needs a data-dependent output shape; here max_len must be a static int.
    B, T, H = x.shape
    duration = duration.astype(jnp.int32)

    # Lane-dense layouts: pad H (output lanes) and T (MXU contraction dim) to
    # multiples of 128.  Padded phonemes get duration 0 -> all-zero sel column.
    H_pad = _round_up(H, 128)
    T_pad = _round_up(T, 128)
    # Output time tile: 256 fills the 256x256 MXU on v6e/v7x; smaller max_len
    # gets a single 8-aligned tile.
    TM = 256 if max_len >= 256 else _round_up(max_len, 8)
    M_pad = _round_up(max_len, TM)

    x_p = jnp.pad(x, ((0, 0), (0, T_pad - T), (0, H_pad - H)))
    dur_p = jnp.pad(duration, ((0, 0), (0, T_pad - T)))

    ends = jnp.cumsum(dur_p, axis=-1, dtype=jnp.int32)        # inclusive cumsum
    starts = ends - dur_p                                      # exclusive cumsum
    bounds = jnp.stack([starts, ends], axis=1)                 # (B, 2, T_pad)

    # TODO(synk): exploit the banded structure of sel for very long T via a
    # scalar-prefetched T-window; a static window bound is only safe after
    # compacting zero-duration phonemes, so the full-T contraction is kept
    # here to stay exact for arbitrary duration patterns.
    out = pl.pallas_call(
        _length_regulator_kernel,
        out_shape=jax.ShapeDtypeStruct((B, M_pad, H_pad), x.dtype),
        grid_spec=pltpu.PrefetchScalarGridSpec(
            num_scalar_prefetch=0,
            grid=(B, M_pad // TM),
            in_specs=[
                pl.BlockSpec((1, 2, T_pad), lambda b, m: (b, 0, 0)),
                pl.BlockSpec((1, T_pad, H_pad), lambda b, m: (b, 0, 0)),
            ],
            out_specs=pl.BlockSpec((1, TM, H_pad), lambda b, m: (b, m, 0)),
        ),
        compiler_params=pltpu.CompilerParams(
            dimension_semantics=("parallel", "parallel"),
            vmem_limit_bytes=64 * 1024 * 1024),
    )(bounds, x_p)

    out = out[:, :max_len, :H]
    # mel_len is trivial glue (PyTorch returns int64 LongTensor; int32 here).
    mel_len = jnp.sum(duration, axis=-1)
    return out, mel_len


def _reference_numpy(x, duration, max_len):
    """Pure-numpy reimplementation of the PyTorch LengthRegulator.forward."""
    B, T, H = x.shape
    out = np.zeros((B, max_len, H), dtype=x.dtype)
    mel_len = np.zeros((B,), dtype=np.int32)
    for b in range(B):
        expanded = np.repeat(x[b], duration[b], axis=0)       # (sum(dur), H)
        mel_len[b] = expanded.shape[0]
        n = min(expanded.shape[0], max_len)
        out[b, :n] = expanded[:n]
    return out, mel_len


if __name__ == "__main__":
    key = jax.random.PRNGKey(0)
    kx, kd = jax.random.split(key)

    B, T, H = 2, 8, 32
    MAX_LEN = 64  # sum of durations per batch fits (T * 7 = 56 <= 64)

    x = jax.random.normal(kx, (B, T, H), dtype=jnp.float32)
    duration = jax.random.randint(kd, (B, T), minval=0, maxval=8,
                                  dtype=jnp.int32)

    # fp32 path
    out, mel_len = length_regulator(x, duration, MAX_LEN)
    out = jax.block_until_ready(out)
    mel_len = jax.block_until_ready(mel_len)

    ref_out, ref_len = _reference_numpy(np.asarray(x), np.asarray(duration),
                                        MAX_LEN)
    assert out.shape == (B, MAX_LEN, H)
    assert np.allclose(np.asarray(out), ref_out, atol=0.0, rtol=0.0)
    assert np.array_equal(np.asarray(mel_len), ref_len)

    # bf16 path (exercises the native bf16 MXU selection; one-hot selection of
    # bf16 values with fp32 accumulation is bit-exact).
    x_bf16 = x.astype(jnp.bfloat16)
    out_bf16, _ = length_regulator(x_bf16, duration, MAX_LEN)
    out_bf16 = jax.block_until_ready(out_bf16)
    ref_bf16, _ = _reference_numpy(np.asarray(x_bf16.astype(jnp.float32)),
                                   np.asarray(duration), MAX_LEN)
    assert np.array_equal(np.asarray(out_bf16.astype(jnp.float32)), ref_bf16)

    print("KERNEL_OK")
</pallas_src>

<mosaic_0001>
module attributes {stable_mosaic.version = 11 : i64} {
  func.func @_length_regulator_kernel(%arg0: i32, %arg1: i32, %arg2: memref<1x2x128xi32, #tpu.memory_space<vmem>>, %arg3: memref<1x128x128xf32, #tpu.memory_space<vmem>>, %arg4: memref<1x64x128xf32, #tpu.memory_space<vmem>>) attributes {dimension_semantics = [#tpu.dimension_semantics<parallel>, #tpu.dimension_semantics<parallel>], iteration_bounds = array<i64: 2, 1>, scalar_prefetch = 0 : i64, scratch_operands = 0 : i64, tpu.core_type = #tpu.core_type<tc>, window_params = [{transform_indices = @transform_0, window_bounds = array<i64: 1, 2, 128>}, {transform_indices = @transform_1, window_bounds = array<i64: 1, 128, 128>}, {transform_indices = @transform_2, window_bounds = array<i64: 1, 64, 128>}]} {
    %c64_i32 = arith.constant 64 : i32
    %0 = arith.muli %arg1, %c64_i32 : i32
    %c0 = arith.constant 0 : index
    %c0_0 = arith.constant 0 : index
    %c0_1 = arith.constant 0 : index
    %1 = vector.load %arg2[%c0, %c0_0, %c0_1] : memref<1x2x128xi32, #tpu.memory_space<vmem>>, vector<1x1x128xi32>
    %2 = vector.shape_cast %1 : vector<1x1x128xi32> to vector<1x128xi32>
    %c0_2 = arith.constant 0 : index
    %c1 = arith.constant 1 : index
    %c0_3 = arith.constant 0 : index
    %3 = vector.load %arg2[%c0_2, %c1, %c0_3] : memref<1x2x128xi32, #tpu.memory_space<vmem>>, vector<1x1x128xi32>
    %4 = vector.shape_cast %3 : vector<1x1x128xi32> to vector<1x128xi32>
    %5 = tpu.iota {dimensions = array<i32: 0>} : vector<64x128xi32>
    %6 = vector.broadcast %0 : i32 to vector<64x128xi32>
    %7 = arith.addi %5, %6 : vector<64x128xi32>
    %8 = vector.broadcast %2 : vector<1x128xi32> to vector<64x128xi32>
    %9 = arith.cmpi sge, %7, %8 : vector<64x128xi32>
    %10 = vector.broadcast %4 : vector<1x128xi32> to vector<64x128xi32>
    %11 = arith.cmpi slt, %7, %10 : vector<64x128xi32>
    %12 = arith.andi %9, %11 : vector<64x128xi1>
    %13 = arith.extui %12 : vector<64x128xi1> to vector<64x128xi32>
    %14 = arith.sitofp %13 : vector<64x128xi32> to vector<64x128xf32>
    %c0_4 = arith.constant 0 : index
    %c0_5 = arith.constant 0 : index
    %c0_6 = arith.constant 0 : index
    %15 = vector.load %arg3[%c0_4, %c0_5, %c0_6] : memref<1x128x128xf32, #tpu.memory_space<vmem>>, vector<1x128x128xf32>
    %16 = vector.shape_cast %15 : vector<1x128x128xf32> to vector<128x128xf32>
    %cst = arith.constant dense<0.000000e+00> : vector<64x128xf32>
    %17 = tpu.matmul %14, %16, %cst {dimension_numbers = #tpu.dot_dimension_numbers<[1], [0], [0], [1], [0, 0, 1, 1], [], []>} : vector<64x128xf32>, vector<128x128xf32>, vector<64x128xf32> -> vector<64x128xf32>
    %c0_7 = arith.constant 0 : index
    %c0_8 = arith.constant 0 : index
    %c0_9 = arith.constant 0 : index
    %18 = vector.load %arg4[%c0_7, %c0_8, %c0_9] : memref<1x64x128xf32, #tpu.memory_space<vmem>>, vector<1x64x128xf32>
    %19 = vector.shape_cast %18 : vector<1x64x128xf32> to vector<64x128xf32>
    %20 = vector.shape_cast %17 : vector<64x128xf32> to vector<1x64x128xf32>
    tpu.vector_store %arg4[%c0_7, %c0_8, %c0_9], %20 {strides = array<i32>} : memref<1x64x128xf32, #tpu.memory_space<vmem>>, vector<1x64x128xf32>,
    return
  }
  func.func @transform_0(%arg0: i32, %arg1: i32) -> (i32, i32, i32) {
    %c0_i32 = arith.constant 0 : i32
    %c0_i32_0 = arith.constant 0 : i32
    %c0_i32_1 = arith.constant 0 : i32
    return %arg0, %c0_i32, %c0_i32_0 : i32, i32, i32
  }
  func.func @transform_1(%arg0: i32, %arg1: i32) -> (i32, i32, i32) {
    %c0_i32 = arith.constant 0 : i32
    %c0_i32_0 = arith.constant 0 : i32
    %c0_i32_1 = arith.constant 0 : i32
    return %arg0, %c0_i32, %c0_i32_0 : i32, i32, i32
  }
  func.func @transform_2(%arg0: i32, %arg1: i32) -> (i32, i32, i32) {
    %c0_i32 = arith.constant 0 : i32
    %c0_i32_0 = arith.constant 0 : i32
    return %arg0, %arg1, %c0_i32 : i32, i32, i32
  }
}

</mosaic_0001>

<bundles_post_ra>
// kernel: length_regulator.1
= control target key start
LH: loop header
LB: loop body
LE: loop exit
PB: predicated region body
PF: predicated region fallthrough
CT: control target
= control target key end

     0   :  { %7 = vsyncpa [#allocation3], 0  ;;  %s1215_s0 = inlined_call_operand.hbm [shape: s32[2,2,128], index: 0, kind: input, shape index: {}]   ;;  %s1216_s1 = inlined_call_operand.hbm [shape: f32[2,128,128], index: 1, kind: input, shape index: {}]   ;;  %s1217_s2 = inlined_call_operand.hbm [shape: f32[2,64,128], index: 2, kind: output, shape index: {}]  }
   0x1   :  { %9 = vsyncpa [#allocation3 + $0x1], 0 }
   0x2   :  { %10 = vsyncpa [#allocation6], 0 }
   0x3   :  { %12 = vsyncpa [#allocation6 + $0x1], 0 }
   0x4   :  { %13 = vsyncpa [#allocation4], 0 }
   0x5   :  { %15 = vsyncpa [#allocation4 + $0x1], 0  ;;  %s932_s9 = smov 0   ;;  %s934_s10 = smov 0  }
   0x6   :  { %s936_s11 = smov 0   ;;  %s938_s12 = smov 0  }
   0x7   :  { %s940_s13 = smov 0   ;;  %s942_s14 = smov 0  }
   0x8 LB: > { %s535_s15 = sadd.s32 4294967295, %s907_s14   ;;  %s536_s16 = sadd.s32 4294967294, %s907_s14   ;;  %s907_s14 = sphi %s942_s14, %s21_s14   ;;  %s903_s13 = sphi %s940_s13, %s1236_s13   ;;  %s899_s12 = sphi %s938_s12, %s1235_s12   ;;  %s895_s11 = sphi %s936_s11, %s1234_s11   ;;  %s891_s10 = sphi %s934_s10, %s1233_s10   ;;  %s887_s9 = sphi %s932_s9, %s1232_s9  }
   0x9   : > { %s33_s17 = sadd.s32 1, %s903_s13  ;;  %s40_s18 = sadd.s32 1, %s895_s11 }
   0xa   : > { %p35_p0 = scmp.ge.s32.totalorder %s33_s17, 2  ;;  %p47_p1 = scmp.ne.s32.totalorder %s895_s11, %s891_s10 }
   0xb   : > { %p48_p2 = scmp.eq.s32.totalorder %s907_s14, 0  ;;  %p53_p3 = scmp.ne.s32.totalorder %s891_s10, %s887_s9 }
   0xc   : > { %s1238_s17 = smov (%p35_p0, %s33_s17), 0  ;;  %p54_p5 = scmp.eq.s32.totalorder %s535_s15, 0 }
   0xd   : > { %p973_p4 = por %p48_p2, %p47_p1  ;;  %s37_s20 = ssub.s32 %s903_s13, %s1238_s17 }
   0xe   : > { %p105_p6 = scmp.eq.s32.totalorder %s535_s15, 1  ;;  %p38_p7 = scmp.eq.s32.totalorder %s37_s20, 0 }
   0xf   : > { %p979_p8 = por %p54_p5, %p53_p3  ;;  %p111_p10 = scmp.eq.s32.totalorder %s536_s16, 1 }
  0x10   : > { %p983_p9 = por %p105_p6, %p47_p1  ;;  %p706_p13 = scmp.lt.s32.totalorder %s907_s14, 2 }
  0x11   : > { %s1221_s21 = scalar_select %p979_p8, 1, 0 }
  0x12   : > { %s1222_s22 = scalar_select %p983_p9, 1, 0 }
  0x13   : > { %s988_s23 = scalar_select %p38_p7, %s895_s11, %s40_s18  }
  0x14   : > { %p990_p11 = por %p111_p10, %p53_p3  ;;  %s997_s25 = sand.u32 1, %s895_s11  }
  0x15   : > { %s539_s26 = sshll.u32 %s997_s25, 1  ;;  %s540_s27 = sshll.u32 %s903_s13, 5 }
  0x16   : > { %s1223_s24 = scalar_select %p990_p11, 1, 0 }
  0x17   : > { %s1004_s30 = scalar_lea.hbm %s1215_s0, %s540_s27  ;;  %s135_s3 = scalar_lea.vmem [#allocation2], %s539_s26 }
  0x18   : > { %s142_s4 = sshll.u32 %s135_s3, 4  ;;  %p1010_p0 = pnand %p706_p13, %p973_p4  ;;  %s1006_s4 = int_to_ptr.vmem [resolvable:$true] %s142_s4 }
  0x19   : > { %s132_s6 = scalar_lea.sflag [#allocation3], %s997_s25  ;;  %s761_s7 = scalar_lea.hbm %s1004_s30, 32 }
  0x1a   : > { %p762_p3 = scmp.ne.s32.totalorder %s1004_s30, %s761_s7  ;;  %p763_p5 = pneg %p1010_p0 }
  0x1b   : > { %s766_s16 = scalar_lea.hbm %s1215_s0, 64  ;;  %p767_p4 = scmp.lt.u32.totalorder %s1004_s30, %s1215_s0 }
  0x1c   : > { %p764_p6 = pnand %p763_p5, %p762_p3  ;;  %p768_p10 = scmp.lt.u32.totalorder %s766_s16, %s761_s7 }
  0x1d   : > { %p770_p12 = scmp.lt.u32.totalorder %s761_s7, %s1004_s30 }
  0x1e   : > { %p765_p7 = pneg %p764_p6  ;;  %p769_p13 = por %p768_p10, %p767_p4 }
  0x20   : > { %p771_p1 = por %p770_p12, %p769_p13 }
  0x22   : > { %p772_p2 = pnand %p771_p1, %p765_p7 }
  0x24   : > { %775 = shalt.err (!%p772_p2)
}
  0x25   : > { %s776_s20 = scalar_lea.vmem %s1006_s4, 32  ;;  %s909_s26 = smov [#allocation2]  }
  0x26   : > { %p777_p3 = scmp.ne.s32.totalorder %s1006_s4, %s776_s20  ;;  %s781_s27 = sshll.u32 %s909_s26, 4  ;;  %s782_s27 = int_to_ptr.vmem [resolvable:$false] %s781_s27 }
  0x27   : > { %s783_s28 = scalar_lea.vmem %s782_s27, 64  ;;  %p784_p9 = scmp.lt.s32.totalorder %s1006_s4, %s782_s27 }
  0x28   : > { %p779_p6 = pnand %p777_p3, %p763_p5  ;;  %p785_p4 = scmp.lt.s32.totalorder %s783_s28, %s776_s20 }
  0x2a   : > { %p780_p11 = pneg %p779_p6  ;;  %p786_p10 = por %p785_p4, %p784_p9 }
  0x2c   : > { %p787_p12 = pnand %p786_p10, %p780_p11 }
  0x2e   : > { %790 = shalt.err (!%p787_p12)
}
  0x2f   : > { %698 = dma.hbm_to_vmem [thread:$0]  (!%p1010_p0), %s1004_s30, 32, %s1006_s4, %s132_s6  }
  0x30   : > { %p1225_p1 = scmp.lt.s32.totalorder %s907_s14, 3  ;;  %p1226_p2 = scmp.ge.s32.totalorder %s907_s14, 1 }
  0x31   : > { %s541_s3 = sshll.u32 %s997_s25, 7  ;;  %s571_s7 = sshll.u32 %s903_s13, 11 }
  0x32   : > { %p1046_p7 = pnand %p1226_p2, %p1225_p1  ;;  %s1055_s16 = scalar_lea.hbm %s1216_s1, %s571_s7 }
  0x33   : > { %s153_s18 = scalar_lea.vmem [#allocation5], %s541_s3  ;;  %s150_s30 = scalar_lea.sflag [#allocation6], %s997_s25 }
  0x34   : > { %s160_s19 = sshll.u32 %s153_s18, 4  ;;  %s791_s4 = scalar_lea.hbm %s1055_s16, 2048  ;;  %s1057_s19 = int_to_ptr.vmem [resolvable:$true] %s160_s19 }
  0x35   : > { %p792_p9 = scmp.ne.s32.totalorder %s1055_s16, %s791_s4  ;;  %s796_s26 = scalar_lea.hbm %s1216_s1, 4096 }
  0x36   : > { %p797_p3 = scmp.lt.u32.totalorder %s1055_s16, %s1216_s1  ;;  %p798_p6 = scmp.lt.u32.totalorder %s796_s26, %s791_s4 }
  0x37   : > { %p794_p11 = pnand %p792_p9, %p763_p5  ;;  %p800_p10 = scmp.lt.u32.totalorder %s791_s4, %s1055_s16 }
  0x38   : > { %p799_p4 = por %p798_p6, %p797_p3 }
  0x39   : > { %p795_p13 = pneg %p794_p11 }
  0x3a   : > { %p801_p12 = por %p800_p10, %p799_p4 }
  0x3c   : > { %p802_p1 = pnand %p801_p12, %p795_p13 }
  0x3e   : > { %805 = shalt.err (!%p802_p1)
}
  0x3f   : > { %s806_s3 = scalar_lea.vmem %s1057_s19, 2048  ;;  %s910_s7 = smov [#allocation5]  }
  0x40   : > { %p807_p2 = scmp.ne.s32.totalorder %s1057_s19, %s806_s3  ;;  %s811_s8 = sshll.u32 %s910_s7, 4  ;;  %s812_s8 = int_to_ptr.vmem [resolvable:$false] %s811_s8 }
  0x41   : > { %s813_s15 = scalar_lea.vmem %s812_s8, 4096  ;;  %p814_p8 = scmp.lt.s32.totalorder %s1057_s19, %s812_s8 }
  0x42   : > { %p809_p9 = pnand %p807_p2, %p763_p5  ;;  %p815_p3 = scmp.lt.s32.totalorder %s813_s15, %s806_s3 }
  0x44   : > { %p810_p11 = pneg %p809_p9  ;;  %p816_p6 = por %p815_p3, %p814_p8 }
  0x46   : > { %p817_p4 = pnand %p816_p6, %p810_p11 }
  0x48   : > { %820 = shalt.err (!%p817_p4)
}
  0x49   : > { %s911_s18 = smov 128   ;;  %s912_s4 = smov 8  }
  0x4a   : > { %701 = dma.hbm_to_vmem [thread:$0]  (!%p1010_p0), %s1055_s16, 2048, %s1057_s19, %s150_s30, %s911_s18, %s911_s18, %s912_s4  }
  0x4b   : > { %172 = sbr.rel (%p1046_p7) target bundleno = 353 (0x161), region = 28  ;;  %s1088_s6 = sand.u32 (!%p1046_p7), 1, %s891_s10  }
  0x4c   : > { %s545_s20 = sshll.u32 (!%p1046_p7), %s1088_s6, 1  ;;  %s175_s26 = scalar_lea.sflag (!%p1046_p7), [#allocation3], %s1088_s6 }
  0x4d   : > { %s178_s27 = scalar_lea.vmem (!%p1046_p7), [#allocation2], %s545_s20  ;;  %p1228_p8 = scmp.ne.s32.totalorder (!%p1046_p7), %s1221_s21, 0 }
  0x52   : > { %874 = dma.done.wait (%p1228_p8), %s175_s26, 32  }
  0x53   : > { %876 = vsyncadd (%p1228_p8), %s175_s26, 4294967264  ;;  %s546_s25 = sshll.u32 %s1088_s6, 7  ;;  %s184_s5 = scalar_lea.sflag [#allocation6], %s1088_s6 }
  0x54   : > { %s1098_s29 = scalar_lea.vmem [#allocation5], %s546_s25 }
  0x55   : > { %878 = dma.done.wait (%p1228_p8), %s184_s5, 2048  }
  0x56   : > { %880 = vsyncadd (%p1228_p8), %s184_s5, 4294965248  ;;  %v217_v0 = vlaneseq  ;;  %v283_v2 = vld [vmem:[%s1098_s29] sm:$0xff]  ;;  %v284_v3 = vld [vmem:[%s1098_s29 + $0x8] sm:$0xff]  ;;  %v913_v19 = vmov 1.0   ;;  %s547_s21 = sshll.u32 %s1088_s6, 6  ;;  %s572_s30 = sshll.u32 %s899_s12, 10 }
  0x57   : > { %v285_v4 = vld [vmem:[%s1098_s29 + $0x10] sm:$0xff]  ;;  %v641_v5 = vpack.c.bf16 %v284_v3, %v283_v2  ;;  %v286_v6 = vld [vmem:[%s1098_s29 + $0x18] sm:$0xff]  ;;  %v287_v8 = vld [vmem:[%s1098_s29 + $0x20] sm:$0xff]  ;;  %s212_s16 = scalar_lea.vmem [#allocation7], %s547_s21  ;;  %s1166_s7 = scalar_lea.hbm %s1217_s2, %s572_s30 }
  0x58   : > { %v1104_v1 = vshrl.u32 %v217_v0, 7  ;;  %v645_v7 = vpack.c.bf16 %v286_v6, %v285_v4  ;;  %v288_v9 = vld [vmem:[%s1098_s29 + $0x28] sm:$0xff]  ;;  %v1113_v12 = vld [vmem:[%s178_s27] ss:$0 sm:$0xff]  ;;  %v1115_v13 = vld [vmem:[%s178_s27 + $0x1] ss:$0 sm:$0xff] }
  0x59   : > { %642 = vmatprep.subr.bf16.mxu0 %v641_v5  ;;  %673 = vmatprep.subr.bf16.mxu1 %v641_v5  ;;  %v649_v11 = vpack.c.bf16 %v288_v9, %v287_v8  ;;  %v289_v14 = vld [vmem:[%s1098_s29 + $0x30] sm:$0xff]  ;;  %v290_v15 = vld [vmem:[%s1098_s29 + $0x38] sm:$0xff]  ;;  %v291_v17 = vld [vmem:[%s1098_s29 + $0x40] sm:$0xff]  ;;  %s428_s19 = sshll.u32 %s212_s16, 4  ;;  %s413_s12 = scalar_lea.sflag [#allocation4], %s1088_s6  ;;  %s1161_s19 = int_to_ptr.vmem [resolvable:$true] %s428_s19 }
  0x5a   : > { %v222_v10 = vadd.s32 32, %v1104_v1  ;;  %644 = vmatpush3.bf16.msra.mxu0 %v641_v5  ;;  %681 = vmatpush3.bf16.msra.mxu1 %v641_v5  ;;  %vm239_vm0 = vcmp.ge.s32.totalorder %v1104_v1, %v1113_v12  ;;  %vm251_vm1 = vcmp.lt.s32.totalorder %v1104_v1, %v1115_v13  ;;  %v653_v16 = vpack.c.bf16 %v290_v15, %v289_v14  ;;  %v292_v18 = vld [vmem:[%s1098_s29 + $0x48] sm:$0xff]  ;;  %v293_v21 = vld [vmem:[%s1098_s29 + $0x50] sm:$0xff]  ;;  %v294_v22 = vld [vmem:[%s1098_s29 + $0x58] sm:$0xff]  ;;  %s821_s8 = scalar_lea.vmem %s1161_s19, 1024  ;;  %p1229_p5 = scmp.ne.s32.totalorder %s1222_s22, 0 }
  0x5b   : > { %646 = vmatprep.subr.bf16.mxu0 %v645_v7  ;;  %674 = vmatprep.subr.bf16.mxu1 %v645_v7  ;;  %vm259_vm3 = vmand %vm239_vm0, %vm251_vm1  ;;  %v657_v20 = vpack.c.bf16 %v292_v18, %v291_v17  ;;  %v661_v23 = vpack.c.bf16 %v294_v22, %v293_v21  ;;  %v295_v24 = vld [vmem:[%s1098_s29 + $0x60] sm:$0xff]  ;;  %v296_v25 = vld [vmem:[%s1098_s29 + $0x68] sm:$0xff]  ;;  %v219_v29 = vadd.s32 8, %v1104_v1  ;;  %v223_v30 = vadd.s32 40, %v1104_v1  ;;  %p822_p0 = scmp.ne.s32.totalorder %s1161_s19, %s821_s8  ;;  %s914_s15 = smov [#allocation7]  }
  0x5c   : > { %vm243_vm2 = vcmp.ge.s32.totalorder %v222_v10, %v1113_v12  ;;  %vm255_vm4 = vcmp.lt.s32.totalorder %v222_v10, %v1115_v13  ;;  %629 = vmatprep.mubr.msk.f32.mxu0 %vm259_vm3, %v913_v19  ;;  %v665_v26 = vpack.c.bf16 %v296_v25, %v295_v24  ;;  %v297_v27 = vld [vmem:[%s1098_s29 + $0x70] sm:$0xff]  ;;  %v298_v28 = vld [vmem:[%s1098_s29 + $0x78] sm:$0xff]  ;;  %v220_v32 = vadd.s32 16, %v1104_v1  ;;  %s825_s18 = sshll.u32 %s914_s15, 4  ;;  %s826_s18 = int_to_ptr.vmem [resolvable:$false] %s825_s18 }
  0x5d   : > { %vm263_vm5 = vmand %vm243_vm2, %vm255_vm4  ;;  %v669_v31 = vpack.c.bf16 %v298_v28, %v297_v27  ;;  %v224_v33 = vadd.s32 48, %v1104_v1  ;;  %vm240_vm6 = vcmp.ge.s32.totalorder %v219_v29, %v1113_v12  ;;  %vm252_vm7 = vcmp.lt.s32.totalorder %v219_v29, %v1115_v13  ;;  %p823_p7 = pnand %p822_p0, %p1229_p5  ;;  %s827_s4 = scalar_lea.vmem %s826_s18, 2048 }
  0x5e   : > { %648 = vmatpush3.bf16.msra.mxu0 %v645_v7  ;;  %682 = vmatpush3.bf16.msra.mxu1 %v645_v7  ;;  %vm244_vm8 = vcmp.ge.s32.totalorder %v223_v30, %v1113_v12  ;;  %vm256_vm9 = vcmp.lt.s32.totalorder %v223_v30, %v1115_v13  ;;  %v221_v34 = vadd.s32 24, %v1104_v1  ;;  %vm241_vm10 = vcmp.ge.s32.totalorder %v220_v32, %v1113_v12  ;;  %vm260_vm12 = vmand %vm240_vm6, %vm252_vm7  ;;  %p828_p10 = scmp.lt.s32.totalorder %s1161_s19, %s826_s18  ;;  %p829_p12 = scmp.lt.s32.totalorder %s827_s4, %s821_s8 }
  0x5f   : > { %650 = vmatprep.subr.bf16.mxu0 %v649_v11  ;;  %675 = vmatprep.subr.bf16.mxu1 %v649_v11  ;;  %vm253_vm11 = vcmp.lt.s32.totalorder %v220_v32, %v1115_v13  ;;  %v225_v35 = vadd.s32 56, %v1104_v1  ;;  %vm245_vm13 = vcmp.ge.s32.totalorder %v224_v33, %v1113_v12  ;;  %vm257_vm14 = vcmp.lt.s32.totalorder %v224_v33, %v1115_v13  ;;  %vm264_vm15 = vmand %vm244_vm8, %vm256_vm9  ;;  %p824_p13 = pneg %p823_p7 }
  0x60   : > { %635 = vmatprep.mubr.msk.f32.mxu1 %vm263_vm5, %v913_v19  ;;  %vm261_vm0 = vmand %vm241_vm10, %vm253_vm11  ;;  %vm242_vm1 = vcmp.ge.s32.totalorder %v221_v34, %v1113_v12  ;;  %vm254_vm2 = vcmp.lt.s32.totalorder %v221_v34, %v1115_v13  ;;  %p830_p1 = por %p829_p12, %p828_p10 }
  0x61   : > { %vm265_vm3 = vmand %vm245_vm13, %vm257_vm14  ;;  %vm246_vm4 = vcmp.ge.s32.totalorder %v225_v35, %v1113_v12  ;;  %vm258_vm5 = vcmp.lt.s32.totalorder %v225_v35, %v1115_v13 }
  0x62   : > { %652 = vmatpush3.bf16.msra.mxu0 %v649_v11  ;;  %683 = vmatpush3.bf16.msra.mxu1 %v649_v11  ;;  %vm262_vm6 = vmand %vm242_vm1, %vm254_vm2  ;;  %p831_p2 = pnand %p830_p1, %p824_p13 }
  0x63   : > { %654 = vmatprep.subr.bf16.mxu0 %v653_v16  ;;  %676 = vmatprep.subr.bf16.mxu1 %v653_v16  ;;  %vm266_vm7 = vmand %vm246_vm4, %vm258_vm5 }
  0x66   : > { %656 = vmatpush3.bf16.msra.mxu0 %v653_v16  ;;  %684 = vmatpush3.bf16.msra.mxu1 %v653_v16 }
  0x67   : > { %658 = vmatprep.subr.bf16.mxu0 %v657_v20  ;;  %677 = vmatprep.subr.bf16.mxu1 %v657_v20 }
  0x6a   : > { %660 = vmatpush3.bf16.msra.mxu0 %v657_v20  ;;  %685 = vmatpush3.bf16.msra.mxu1 %v657_v20 }
  0x6b   : > { %662 = vmatprep.subr.bf16.mxu0 %v661_v23  ;;  %678 = vmatprep.subr.bf16.mxu1 %v661_v23 }
  0x6e   : > { %664 = vmatpush3.bf16.msra.mxu0 %v661_v23  ;;  %686 = vmatpush3.bf16.msra.mxu1 %v661_v23 }
  0x6f   : > { %666 = vmatprep.subr.bf16.mxu0 %v665_v26  ;;  %679 = vmatprep.subr.bf16.mxu1 %v665_v26 }
  0x72   : > { %668 = vmatpush3.bf16.msra.mxu0 %v665_v26  ;;  %687 = vmatpush3.bf16.msra.mxu1 %v665_v26 }
  0x73   : > { %670 = vmatprep.subr.bf16.mxu0 %v669_v31  ;;  %680 = vmatprep.subr.bf16.mxu1 %v669_v31 }
  0x76   : > { %672 = vmatpush3.bf16.msra.mxu0 %v669_v31  ;;  %688 = vmatpush3.bf16.msra.mxu1 %v669_v31 }
  0x79   : > { %630 = vmatmul.mubr.msk.f32.vlgmr.msra.gmra.mrb[0].mxu0 %vm260_vm12, %v913_v19  ;;  %636 = vmatmul.mubr.msk.f32.vlgmr.msra.gmra.mrb[0].mxu1 %vm264_vm15, %v913_v19 }
  0x7a   : > { %632 = vmatprep.mubr.msk.f32.mxu0 %vm261_vm0, %v913_v19  ;;  %638 = vmatprep.mubr.msk.f32.mxu1 %vm265_vm3, %v913_v19 }
  0x7d   : > { %633 = vmatmul.mubr.msk.f32.gmra.mrb[2].mxu0 %vm262_vm6, %v913_v19  ;;  %639 = vmatmul.mubr.msk.f32.gmra.mrb[2].mxu1 %vm266_vm7, %v913_v19 }
 0x14c   : > { %v631_v36 = vpop.f32.mrb[0].mxu0  ;;  %v637_v37 = vpop.f32.mrb[0].mxu1 }
 0x14d   : > { %405 = vst [vmem:[%s212_s16 + $0x8] sm:$0xff] %v631_v36  ;;  %409 = vst [vmem:[%s212_s16 + $0x28] sm:$0xff] %v637_v37  ;;  %v365_v38 = vpop.f32.mrb[1].mxu0  ;;  %v385_v39 = vpop.f32.mrb[1].mxu1 }
 0x14e   : > { %404 = vst [vmem:[%s212_s16] sm:$0xff] %v365_v38  ;;  %408 = vst [vmem:[%s212_s16 + $0x20] sm:$0xff] %v385_v39 }
 0x150   : > { %v634_v40 = vpop.f32.mrb[2].mxu0  ;;  %v640_v41 = vpop.f32.mrb[2].mxu1 }
 0x151   : > { %407 = vst [vmem:[%s212_s16 + $0x18] sm:$0xff] %v634_v40  ;;  %411 = vst [vmem:[%s212_s16 + $0x38] sm:$0xff] %v640_v41  ;;  %v375_v42 = vpop.f32.mrb[3].mxu0  ;;  %v395_v43 = vpop.f32.mrb[3].mxu1 }
 0x152   : > { %406 = vst [vmem:[%s212_s16 + $0x10] sm:$0xff] %v375_v42  ;;  %410 = vst [vmem:[%s212_s16 + $0x30] sm:$0xff] %v395_v43 }
 0x153   : > { %834 = shalt.err (!%p831_p2)
}
 0x154   : > { %s835_s20 = scalar_lea.hbm %s1166_s7, 1024  ;;  %s839_s25 = scalar_lea.hbm %s1217_s2, 2048 }
 0x155   : > { %p836_p9 = scmp.ne.s32.totalorder %s1166_s7, %s835_s20  ;;  %p840_p6 = scmp.lt.u32.totalorder %s1166_s7, %s1217_s2 }
 0x156   : > { %p841_p4 = scmp.lt.u32.totalorder %s839_s25, %s835_s20  ;;  %p843_p0 = scmp.lt.u32.totalorder %s835_s20, %s1166_s7 }
 0x157   : > { %p837_p11 = pnand %p836_p9, %p1229_p5 }
 0x158   : > { %p842_p8 = por %p841_p4, %p840_p6 }
 0x159   : > { %p838_p3 = pneg %p837_p11 }
 0x15a   : > { %p844_p7 = por %p843_p0, %p842_p8 }
 0x15c   : > { %p845_p13 = pnand %p844_p7, %p838_p3 }
 0x15e   : > { %848 = shalt.err (!%p845_p13)
}
 0x15f   : > { %s915_s21 = smov 128   ;;  %s916_s16 = smov 8  }
 0x160   : > { %693 = dma.vmem_to_hbm [thread:$0]  (%p1229_p5), %s1161_s19, 1024, %s1166_s7, %s413_s12, %s915_s21, %s915_s21, %s916_s16  }
 0x161 PF: > { %s443_s30 = sand.u32 1, %s887_s9   ;;  %p1230_p10 = scmp.ne.s32.totalorder %s1223_s24, 0 }
 0x162   : > { %p1231_p12 = scmp.ge.s32.totalorder %s907_s14, 2  ;;  %s444_s28 = scalar_lea.sflag [#allocation4], %s443_s30 }
 0x164   : > { %p703_p1 = pnand %p1231_p12, %p1230_p10 }
 0x166   : > { %882 = dma.done.wait (!%p703_p1), %s444_s28, 1024  }
 0x167   : > { %884 = vsyncadd (!%p703_p1), %s444_s28, 4294966272  ;;  %s21_s14 = sadd.s32 1, %s907_s14   ;;  %s1232_s9 = smov %s891_s10 }
 0x168   : > { %p18_p2 = scmp.ge.s32.totalorder %s21_s14, 4   ;;  %s1233_s10 = smov %s895_s11 }
 0x169   : > { %s1234_s11 = smov %s988_s23  ;;  %s1235_s12 = smov %s903_s13 }
 0x16a   : > { %s1236_s13 = smov %s1238_s17  ;;  %20 = sbr.rel (!%p18_p2) target bundleno = 8 (0x8), region = 86 }
 0x171   :  { %449 = vsyncpa [#allocation3], 1 }
 0x172   :  { %451 = vsyncpa [#allocation3 + $0x1], 1 }
 0x173   :  { %452 = vsyncpa [#allocation6], 1 }
 0x174   :  { %454 = vsyncpa [#allocation6 + $0x1], 1 }
 0x175   :  { %455 = vsyncpa [#allocation4], 1 }
 0x176   :  { %457 = vsyncpa [#allocation4 + $0x1], 1 }

</bundles_post_ra>
